<compile_context>
chip_gen: v7x
topology: tpu7x:2x2x1
jax: 0.10.0
libtpu: 0.0.40
codegen_flags: <defaults>
</compile_context>

<pallas_src>
import jax
import jax.numpy as jnp
from jax.experimental import pallas as pl
from jax.experimental.pallas import tpu as pltpu

INPUT_SIZE = 117     # mushroom one-hot feature count
HIDDEN_SIZE = 100
NUM_CLASSES = 2

LANE = 128
SUBLANE = 8
NEG_PAD = -1e30      # bias of padded classes -> exp() underflows to exactly 0


def _round_up(n, m):
    return (n + m - 1) // m * m


def _cdiv(a, b):
    return -(-a // b)


def mlp_logsoftmax_kernel(x_ref, w1_ref, b1_ref, w2_ref, b2_ref, o_ref):
    """x:(TB,F) w1:(F,Hp) b1:(1,Hp) w2:(Hp,Cp) b2:(1,Cp) -> o:(8,TB) log-probs
    with classes on sublanes (row c = log-prob of class c; rows >= C are padding)."""
    # Linear 1 (MXU, f32 accumulate) + bias + ReLU, elementwise in f32 (v5e-safe).
    h = jnp.dot(x_ref[...], w1_ref[...], preferred_element_type=jnp.float32)
    h = jnp.maximum(h + b1_ref[...], 0.0)

    # Linear 2 on the lane-dense padded class axis (padded W2 columns are 0,
    # padded biases are -1e30 so they vanish in the softmax).
    logits = jnp.dot(h.astype(w2_ref.dtype), w2_ref[...],
                     preferred_element_type=jnp.float32) + b2_ref[...]

    # Numerically stable log-softmax over the (padded) class axis.
    m = jnp.max(logits, axis=1, keepdims=True)
    z = logits - m
    lse = jnp.log(jnp.sum(jnp.exp(z), axis=1, keepdims=True))
    logp = z - lse                                        # (TB, Cp) f32

    # Compact output: transpose (XLU) and keep only the first 8 class rows ->
    # (8, TB) f32 store, 16x less writeback than a (TB, 128) f32 slab.
    o_ref[...] = logp.T[: o_ref.shape[0], :].astype(o_ref.dtype)


def prepare_params(w1, b1, w2, b2, *, matmul_dtype=jnp.bfloat16):
    """Pad / cast parameters ONCE (hoisted out of the per-forward path).
    w1:(F,H), b1:(H,), w2:(H,C), b2:(C,); weights already laid out (in, out)."""
    F, H = w1.shape
    C = w2.shape[1]
    Hp = _round_up(H, LANE)
    Cp = _round_up(C, LANE)       # lane-dense class axis for the second matmul
    w1p = jnp.zeros((F, Hp), matmul_dtype).at[:, :H].set(w1.astype(matmul_dtype))
    b1p = jnp.zeros((1, Hp), jnp.float32).at[0, :H].set(
        b1.reshape(-1).astype(jnp.float32))
    w2p = jnp.zeros((Hp, Cp), matmul_dtype).at[:H, :C].set(w2.astype(matmul_dtype))
    b2p = jnp.full((1, Cp), NEG_PAD, jnp.float32).at[0, :C].set(
        b2.reshape(-1).astype(jnp.float32))
    return (w1p, b1p, w2p, b2p, C)


def _x_spec(TB, F, n_tiles):
    index_map = lambda i: (i, 0)
    # Deeper buffering on the only streaming input when the grid is short but real.
    if n_tiles >= 3 and hasattr(pl, "Buffered"):
        try:
            return pl.BlockSpec((TB, F), index_map, pipeline_mode=pl.Buffered(3))
        except TypeError:
            pass
    return pl.BlockSpec((TB, F), index_map)


def neural_net_forward(x, params, *, row_tile=512):
    """x:(B,F); params from prepare_params().
    Returns log_softmax(relu(x @ w1 + b1) @ w2 + b2, axis=1), shape (B, C), f32."""
    w1p, b1p, w2p, b2p, C = params
    B, F = x.shape
    Hp = w1p.shape[1]
    Cp = w2p.shape[1]
    CSUB = SUBLANE                        # class rows stored (C <= 8)

    x = x.astype(w1p.dtype)               # bf16 default: halves the x HBM read

    Bp = _round_up(B, SUBLANE)

    if Bp < 2 * LANE:
        # Small batch: single un-gridded call (no pipeline prologue/epilogue).
        xp = x if Bp == B else jnp.zeros((Bp, F), x.dtype).at[:B].set(x)
        out = pl.pallas_call(
            mlp_logsoftmax_kernel,
            out_shape=jax.ShapeDtypeStruct((CSUB, Bp), jnp.float32),
        )(xp, w1p, b1p, w2p, b2p)
        return out[:C, :B].T

    # Gridded path: row tiles are multiples of 128 (lane-dense transposed store);
    # target >= 4 tiles so the "parallel" axis splits across both TCs on v7x,
    # capped at row_tile rows per step.
    TB = min(_round_up(row_tile, LANE), max(LANE, _round_up(_cdiv(Bp, 4), LANE)))
    n_tiles = _cdiv(Bp, TB)
    Bp = n_tiles * TB
    # Row padding only when B is not already grid-aligned (ragged batches); the
    # common case streams x straight from the caller with no extra copy.
    xp = x if Bp == B else jnp.zeros((Bp, F), x.dtype).at[:B].set(x)

    out = pl.pallas_call(
        mlp_logsoftmax_kernel,
        out_shape=jax.ShapeDtypeStruct((CSUB, Bp), jnp.float32),
        grid=(n_tiles,),
        in_specs=[
            _x_spec(TB, F, n_tiles),                    # streaming row tile of x
            pl.BlockSpec((F, Hp), lambda i: (0, 0)),    # W1 resident in VMEM
            pl.BlockSpec((1, Hp), lambda i: (0, 0)),    # b1 resident
            pl.BlockSpec((Hp, Cp), lambda i: (0, 0)),   # W2 resident
            pl.BlockSpec((1, Cp), lambda i: (0, 0)),    # b2 resident
        ],
        out_specs=pl.BlockSpec((CSUB, TB), lambda i: (0, i)),  # class-on-sublanes
        compiler_params=pltpu.CompilerParams(
            dimension_semantics=("parallel",)),         # megacore split on v7x
    )(xp, w1p, b1p, w2p, b2p)

    return out[:C, :B].T


def init_params(key, input_size, hidden_size, num_classes):
    # torch.nn.Linear-style init: U(-1/sqrt(fan_in), +1/sqrt(fan_in)); weights
    # pre-transposed to (in, out) so the kernel computes x @ W + b.
    k1, k2, k3, k4 = jax.random.split(key, 4)
    lim1 = 1.0 / jnp.sqrt(jnp.float32(input_size))
    lim2 = 1.0 / jnp.sqrt(jnp.float32(hidden_size))
    w1 = jax.random.uniform(k1, (input_size, hidden_size), jnp.float32, -lim1, lim1)
    b1 = jax.random.uniform(k2, (hidden_size,), jnp.float32, -lim1, lim1)
    w2 = jax.random.uniform(k3, (hidden_size, num_classes), jnp.float32, -lim2, lim2)
    b2 = jax.random.uniform(k4, (num_classes,), jnp.float32, -lim2, lim2)
    return w1, b1, w2, b2


def reference_f32(x, w1, b1, w2, b2):
    h = jnp.maximum(x @ w1 + b1, 0.0)
    return jax.nn.log_softmax(h @ w2 + b2, axis=1)


def reference_bf16(x, w1, b1, w2, b2):
    # Same bf16-matmul / f32-accumulate recipe the kernel's default path uses.
    xb, w1b, w2b = (a.astype(jnp.bfloat16) for a in (x, w1, w2))
    h = jnp.maximum(jnp.dot(xb, w1b, preferred_element_type=jnp.float32) + b1, 0.0)
    logits = jnp.dot(h.astype(jnp.bfloat16), w2b,
                     preferred_element_type=jnp.float32) + b2
    return jax.nn.log_softmax(logits, axis=1)


if __name__ == "__main__":
    key = jax.random.PRNGKey(0)
    kp, kx1, kx2, kx3 = jax.random.split(key, 4)
    w1, b1, w2, b2 = init_params(kp, INPUT_SIZE, HIDDEN_SIZE, NUM_CLASSES)

    # Pad / cast parameters once (hoisted out of the per-call path).
    params_bf16 = prepare_params(w1, b1, w2, b2)                       # default path
    params_f32 = prepare_params(w1, b1, w2, b2, matmul_dtype=jnp.float32)

    # --- small batch, f32 params: single-tile un-gridded fast path ---
    x_small = (jax.random.uniform(kx1, (8, INPUT_SIZE)) > 0.5).astype(jnp.float32)
    out_small = jax.block_until_ready(neural_net_forward(x_small, params_f32))
    assert out_small.shape == (8, NUM_CLASSES)
    assert jnp.allclose(out_small, reference_f32(x_small, w1, b1, w2, b2),
                        atol=1e-4, rtol=1e-4)

    # --- 512-row batch, default bf16 path: 4 row tiles of 128, parallel batch axis ---
    x_big = (jax.random.uniform(kx2, (512, INPUT_SIZE)) > 0.5).astype(jnp.float32)
    out_big = jax.block_until_ready(neural_net_forward(x_big, params_bf16))
    assert out_big.shape == (512, NUM_CLASSES)
    assert jnp.allclose(out_big, reference_bf16(x_big, w1, b1, w2, b2),
                        atol=5e-3, rtol=5e-3)

    # --- ragged batch (not tile-aligned): wrapper pads rows only in this case ---
    x_odd = (jax.random.uniform(kx3, (300, INPUT_SIZE)) > 0.5).astype(jnp.float32)
    out_odd = jax.block_until_ready(neural_net_forward(x_odd, params_bf16))
    assert out_odd.shape == (300, NUM_CLASSES)
    assert jnp.allclose(out_odd, reference_bf16(x_odd, w1, b1, w2, b2),
                        atol=5e-3, rtol=5e-3)

    print("KERNEL_OK")
</pallas_src>

<mosaic_0001>
module attributes {stable_mosaic.version = 11 : i64} {
  func.func @mlp_logsoftmax_kernel(%arg0: memref<8x117xf32, #tpu.memory_space<vmem>>, %arg1: memref<117x128xf32, #tpu.memory_space<vmem>>, %arg2: memref<1x128xf32, #tpu.memory_space<vmem>>, %arg3: memref<128x128xf32, #tpu.memory_space<vmem>>, %arg4: memref<1x128xf32, #tpu.memory_space<vmem>>, %arg5: memref<8x8xf32, #tpu.memory_space<vmem>>) attributes {dimension_semantics = [], scalar_prefetch = 0 : i64, scratch_operands = 0 : i64, tpu.core_type = #tpu.core_type<tc>} {
    %c0 = arith.constant 0 : index
    %c0_0 = arith.constant 0 : index
    %0 = vector.load %arg0[%c0, %c0_0] : memref<8x117xf32, #tpu.memory_space<vmem>>, vector<8x117xf32>
    %c0_1 = arith.constant 0 : index
    %c0_2 = arith.constant 0 : index
    %1 = vector.load %arg1[%c0_1, %c0_2] : memref<117x128xf32, #tpu.memory_space<vmem>>, vector<117x128xf32>
    %cst = arith.constant dense<0.000000e+00> : vector<8x128xf32>
    %2 = tpu.matmul %0, %1, %cst {dimension_numbers = #tpu.dot_dimension_numbers<[1], [0], [0], [1], [0, 0, 1, 1], [], []>} : vector<8x117xf32>, vector<117x128xf32>, vector<8x128xf32> -> vector<8x128xf32>
    %c0_3 = arith.constant 0 : index
    %c0_4 = arith.constant 0 : index
    %3 = vector.load %arg2[%c0_3, %c0_4] : memref<1x128xf32, #tpu.memory_space<vmem>>, vector<1x128xf32>
    %4 = vector.broadcast %3 : vector<1x128xf32> to vector<8x128xf32>
    %5 = arith.addf %2, %4 : vector<8x128xf32>
    %cst_5 = arith.constant 0.000000e+00 : f32
    %6 = vector.broadcast %cst_5 : f32 to vector<8x128xf32>
    %7 = arith.maximumf %5, %6 : vector<8x128xf32>
    %c0_6 = arith.constant 0 : index
    %c0_7 = arith.constant 0 : index
    %8 = vector.load %arg3[%c0_6, %c0_7] : memref<128x128xf32, #tpu.memory_space<vmem>>, vector<128x128xf32>
    %cst_8 = arith.constant dense<0.000000e+00> : vector<8x128xf32>
    %9 = tpu.matmul %7, %8, %cst_8 {dimension_numbers = #tpu.dot_dimension_numbers<[1], [0], [0], [1], [0, 0, 1, 1], [], []>} : vector<8x128xf32>, vector<128x128xf32>, vector<8x128xf32> -> vector<8x128xf32>
    %c0_9 = arith.constant 0 : index
    %c0_10 = arith.constant 0 : index
    %10 = vector.load %arg4[%c0_9, %c0_10] : memref<1x128xf32, #tpu.memory_space<vmem>>, vector<1x128xf32>
    %11 = vector.broadcast %10 : vector<1x128xf32> to vector<8x128xf32>
    %12 = arith.addf %9, %11 : vector<8x128xf32>
    %cst_11 = arith.constant dense<0xFF800000> : vector<8xf32>
    %13 = vector.multi_reduction <maximumf>, %12, %cst_11 [1] : vector<8x128xf32> to vector<8xf32>
    %14 = vector.shape_cast %13 : vector<8xf32> to vector<8x1xf32>
    %15 = vector.broadcast %14 : vector<8x1xf32> to vector<8x128xf32>
    %16 = arith.subf %12, %15 : vector<8x128xf32>
    %17 = math.exp %16 : vector<8x128xf32>
    %cst_12 = arith.constant dense<0.000000e+00> : vector<8xf32>
    %18 = vector.multi_reduction <add>, %17, %cst_12 [1] : vector<8x128xf32> to vector<8xf32>
    %19 = vector.shape_cast %18 : vector<8xf32> to vector<8x1xf32>
    %20 = math.log %19 : vector<8x1xf32>
    %21 = vector.broadcast %20 : vector<8x1xf32> to vector<8x128xf32>
    %22 = arith.subf %16, %21 : vector<8x128xf32>
    %23 = tpu.transpose %22, [1, 0] : vector<8x128xf32> -> vector<128x8xf32>
    %24 = vector.extract_strided_slice %23 {offsets = [0, 0], sizes = [8, 8], strides = [1, 1]} : vector<128x8xf32> to vector<8x8xf32>
    %c0_13 = arith.constant 0 : index
    %c0_14 = arith.constant 0 : index
    %25 = vector.load %arg5[%c0_13, %c0_14] : memref<8x8xf32, #tpu.memory_space<vmem>>, vector<8x8xf32>
    tpu.vector_store %arg5[%c0_13, %c0_14], %24 {strides = array<i32>} : memref<8x8xf32, #tpu.memory_space<vmem>>, vector<8x8xf32>,
    return
  }
}

</mosaic_0001>

<bundles_post_ra>
// kernel: tpu_custom_call.1
= control target key start
LH: loop header
LB: loop body
LE: loop exit
PB: predicated region body
PF: predicated region fallthrough
CT: control target
= control target key end

     0   :  { %10 = vsyncpa [#allocation3], 0  ;;  %s689_s0 = inlined_call_operand.hbm [shape: f32[8,117], index: 0, kind: input, shape index: {}]   ;;  %s690_s1 = inlined_call_operand.hbm [shape: f32[117,128], index: 1, kind: input, shape index: {}]   ;;  %s691_s2 = inlined_call_operand.vmem [shape: f32[1,128], index: 2, kind: input, shape index: {}]   ;;  %s692_s3 = inlined_call_operand.hbm [shape: f32[128,128], index: 3, kind: input, shape index: {}]   ;;  %s693_s4 = inlined_call_operand.vmem [shape: f32[1,128], index: 4, kind: input, shape index: {}]   ;;  %s694_s5 = inlined_call_operand.hbm [shape: f32[8,8], index: 5, kind: output, shape index: {}]  }
   0x1   :  { %11 = vsyncpa [#allocation6], 0 }
   0x2   :  { %12 = vsyncpa [#allocation4], 0  ;;  %s572_s18 = smov [#allocation5]   ;;  %s478_s22 = scalar_lea.hbm %s690_s1, 1920 }
   0x3   :  { %s28_s19 = sshll.u32 %s572_s18, 4  ;;  %p479_p0 = scmp.ne.s32.totalorder %s690_s1, %s478_s22  ;;  %s29_s19 = int_to_ptr.vmem [resolvable:$true] %s28_s19 }
   0x4   :  { %p482_p1 = scmp.lt.u32.totalorder %s478_s22, %s690_s1 }
   0x6   :  { %p484_p2 = pnand %p482_p1, %p479_p0 }
   0x8   :  { %487 = shalt.err (!%p484_p2)
}
   0x9   :  { %s488_s27 = scalar_lea.vmem %s29_s19, 1920  ;;  %p493_p4 = scmp.lt.s32.totalorder %s29_s19, %s29_s19 }
   0xa   :  { %p489_p3 = scmp.ne.s32.totalorder %s29_s19, %s488_s27  ;;  %p494_p5 = scmp.lt.s32.totalorder %s488_s27, %s488_s27 }
   0xc   :  { %p495_p6 = por %p494_p5, %p493_p4 }
   0xe   :  { %p496_p7 = pnand %p495_p6, %p489_p3 }
  0x10   :  { %499 = shalt.err (!%p496_p7)
}
  0x11   :  { %s573_s28 = smov 128   ;;  %s574_s29 = smov 8  }
  0x12   :  { %34 = dma.hbm_to_vmem [thread:$0]  %s690_s1, 1920, %s29_s19, [#allocation6], %s573_s28, %s573_s28, %s574_s29  }
  0x13   :  { %s575_s7 = smov [#allocation2]   ;;  %s576_s9 = smov [#allocation7]  }
  0x14   :  { %s19_s8 = sshll.u32 %s575_s7, 4  ;;  %s42_s10 = sshll.u32 %s576_s9, 4  ;;  %s20_s8 = int_to_ptr.vmem [resolvable:$true] %s19_s8  ;;  %s43_s10 = int_to_ptr.vmem [resolvable:$true] %s42_s10 }
  0x15   :  { %s500_s13 = scalar_lea.hbm %s689_s0, 128 }
  0x16   :  { %p501_p8 = scmp.ne.s32.totalorder %s689_s0, %s500_s13  ;;  %p504_p9 = scmp.lt.u32.totalorder %s500_s13, %s689_s0 }
  0x18   :  { %p506_p10 = pnand %p504_p9, %p501_p8 }
  0x1a   :  { %509 = shalt.err (!%p506_p10)
}
  0x1b   :  { %s510_s1 = scalar_lea.vmem %s20_s8, 128  ;;  %p515_p12 = scmp.lt.s32.totalorder %s20_s8, %s20_s8 }
  0x1c   :  { %p511_p11 = scmp.ne.s32.totalorder %s20_s8, %s510_s1  ;;  %p516_p13 = scmp.lt.s32.totalorder %s510_s1, %s510_s1 }
  0x1e   :  { %p517_p0 = por %p516_p13, %p515_p12 }
  0x20   :  { %p518_p1 = pnand %p517_p0, %p511_p11 }
  0x22   :  { %521 = shalt.err (!%p518_p1)
}
  0x23   :  { %22 = dma.hbm_to_vmem [thread:$0]  %s689_s0, 128, %s20_s8, [#allocation3]  }
  0x24   :  { %s522_s22 = scalar_lea.hbm %s692_s3, 2048 }
  0x25   :  { %p523_p2 = scmp.ne.s32.totalorder %s692_s3, %s522_s22  ;;  %p526_p3 = scmp.lt.u32.totalorder %s522_s22, %s692_s3 }
  0x27   :  { %p528_p4 = pnand %p526_p3, %p523_p2 }
  0x29   :  { %531 = shalt.err (!%p528_p4)
}
  0x2a   :  { %s532_s27 = scalar_lea.vmem %s43_s10, 2048  ;;  %p537_p6 = scmp.lt.s32.totalorder %s43_s10, %s43_s10 }
  0x2b   :  { %p533_p5 = scmp.ne.s32.totalorder %s43_s10, %s532_s27  ;;  %p538_p7 = scmp.lt.s32.totalorder %s532_s27, %s532_s27 }
  0x2d   :  { %p539_p8 = por %p538_p7, %p537_p6 }
  0x2f   :  { %p540_p9 = pnand %p539_p8, %p533_p5 }
  0x31   :  { %543 = shalt.err (!%p540_p9)
}
  0x32   :  { %48 = dma.hbm_to_vmem [thread:$0]  %s692_s3, 2048, %s43_s10, [#allocation6], %s573_s28, %s573_s28, %s574_s29  }
  0x33   :  { %566 = dma.done.wait [#allocation3], 128  }
  0x34   :  { %567 = vsyncadd [#allocation3], 4294967168 }
  0x35   :  { %568 = dma.done.wait [#allocation6], 3968  }
  0x36   :  { %569 = vsyncadd [#allocation6], 4294963328  ;;  %v577_v0 = vmov 0.0|0.0   ;;  %vm578_vm0 = vmmov 0   ;;  %v579_v1 = vmov 0.0   ;;  %v61_v2 = vld [vmem:[#allocation5] sm:$0xff] }
  0x37   :  { %420 = vmatprep.subr.bf16.mxu0 %v577_v0  ;;  %382 = vmatprep.mubr.msk.f32.mxu0 %vm578_vm0, %v579_v1  ;;  %v62_v3 = vld [vmem:[#allocation5 + $0x8] sm:$0xff]  ;;  %v63_v4 = vld [vmem:[#allocation5 + $0x10] sm:$0xff]  ;;  %v64_v6 = vld [vmem:[#allocation5 + $0x18] sm:$0xff]  ;;  %vm87_vm1 = vcmask 1044480   ;;  %vm83_vm2 = vcmask 957440   ;;  %vm297_vm3 = vcmask 64512  }
  0x38   :  { %441 = vmatprep.subr.bf16.mxu1 %v577_v0  ;;  %417 = vmatprep.mubr.msk.f32.mxu1 %vm578_vm0, %v579_v1  ;;  %v421_v5 = vpack.c.bf16 %v62_v3, %v61_v2  ;;  %v424_v7 = vpack.c.bf16 %v64_v6, %v63_v4  ;;  %v65_v8 = vld [vmem:[#allocation5 + $0x20] sm:$0xff]  ;;  %v66_v9 = vld [vmem:[#allocation5 + $0x28] sm:$0xff]  ;;  %v162_v10 = vld [vmem:[#allocation7] sm:$0xff] }
  0x39   :  { %v163_v11 = vld [vmem:[#allocation7 + $0x8] sm:$0xff]  ;;  %v164_v13 = vld [vmem:[#allocation7 + $0x10] sm:$0xff]  ;;  %v165_v14 = vld [vmem:[#allocation7 + $0x18] sm:$0xff]  ;;  %v427_v15 = vpack.c.bf16 %v66_v9, %v65_v8 }
  0x3a   :  { %422 = vmatpush3.bf16.msra.mxu0 %v421_v5  ;;  %v442_v12 = vpack.c.bf16 %v163_v11, %v162_v10  ;;  %v67_v16 = vld [vmem:[#allocation5 + $0x30] sm:$0xff]  ;;  %v68_v17 = vld [vmem:[#allocation5 + $0x38] sm:$0xff]  ;;  %v445_v18 = vpack.c.bf16 %v165_v14, %v164_v13  ;;  %v167_v20 = vld [vmem:[#allocation7 + $0x28] sm:$0xff] }
  0x3b   :  { %423 = vmatprep.subr.bf16.mxu0 %v577_v0  ;;  %v166_v19 = vld [vmem:[#allocation7 + $0x20] sm:$0xff]  ;;  %v430_v21 = vpack.c.bf16 %v68_v17, %v67_v16  ;;  %v69_v22 = vld [vmem:[#allocation5 + $0x40] sm:$0xff]  ;;  %v70_v23 = vld [vmem:[#allocation5 + $0x48] sm:$0xff] }
  0x3c   :  { %443 = vmatpush3.bf16.msra.mxu1 %v442_v12  ;;  %v448_v24 = vpack.c.bf16 %v167_v20, %v166_v19  ;;  %v168_v25 = vld [vmem:[#allocation7 + $0x30] sm:$0xff]  ;;  %v169_v26 = vld [vmem:[#allocation7 + $0x38] sm:$0xff]  ;;  %v433_v27 = vpack.c.bf16 %v70_v23, %v69_v22  ;;  %v72_v29 = vld [vmem:[#allocation5 + $0x58] sm:$0xff] }
  0x3d   :  { %444 = vmatprep.subr.bf16.mxu1 %v577_v0  ;;  %v71_v28 = vld [vmem:[#allocation5 + $0x50] sm:$0xff]  ;;  %v451_v30 = vpack.c.bf16 %v169_v26, %v168_v25  ;;  %v170_v31 = vld [vmem:[#allocation7 + $0x40] sm:$0xff]  ;;  %v171_v32 = vld [vmem:[#allocation7 + $0x48] sm:$0xff] }
  0x3e   :  { %425 = vmatpush3.bf16.msra.mxu0 %v424_v7  ;;  %v436_v33 = vpack.c.bf16 %v72_v29, %v71_v28  ;;  %v73_v34 = vld [vmem:[#allocation5 + $0x60] sm:$0xff]  ;;  %v74_v35 = vld [vmem:[#allocation5 + $0x68] sm:$0xff]  ;;  %v454_v36 = vpack.c.bf16 %v171_v32, %v170_v31  ;;  %v173_v38 = vld [vmem:[#allocation7 + $0x58] sm:$0xff] }
  0x3f   :  { %426 = vmatprep.subr.bf16.mxu0 %v577_v0  ;;  %v172_v37 = vld [vmem:[#allocation7 + $0x50] sm:$0xff]  ;;  %v439_v39 = vpack.c.bf16 %v74_v35, %v73_v34  ;;  %v174_v41 = vld [vmem:[#allocation7 + $0x60] sm:$0xff]  ;;  %v175_v42 = vld [vmem:[#allocation7 + $0x68] sm:$0xff] }
  0x40   :  { %446 = vmatpush3.bf16.msra.mxu1 %v445_v18  ;;  %v457_v40 = vpack.c.bf16 %v173_v38, %v172_v37  ;;  %v75_v43 = vld [vmem:[#allocation5 + $0x70] sm:$0x1f]  ;;  %v460_v44 = vpack.c.bf16 %v175_v42, %v174_v41  ;;  %v60_v45 = vld [vmem:[#allocation2] sm:$0xff]  ;;  %v176_v46 = vld [vmem:[#allocation7 + $0x70] sm:$0xff] }
  0x41   :  { %447 = vmatprep.subr.bf16.mxu1 %v577_v0  ;;  %v177_v47 = vld [vmem:[#allocation7 + $0x78] sm:$0xff]  ;;  %v315_v49 = vld [vmem:[%s691_s2] ss:$0 sm:$0xff]  ;;  %s580_s2 = smov [#allocation8]  }
  0x42   :  { %428 = vmatpush3.bf16.msra.mxu0 %v427_v15  ;;  %v463_v48 = vpack.c.bf16 %v177_v47, %v176_v46  ;;  %v318_v54 = vld [vmem:[%s693_s4] ss:$0 sm:$0xff]  ;;  %s305_s7 = sshll.u32 %s580_s2, 4  ;;  %s306_s7 = int_to_ptr.vmem [resolvable:$true] %s305_s7 }
  0x43   :  { %429 = vmatprep.subr.bf16.mxu0 %v577_v0  ;;  %s544_s4 = scalar_lea.vmem %s306_s7, 128  ;;  %p549_p11 = scmp.lt.s32.totalorder %s306_s7, %s306_s7 }
  0x44   :  { %449 = vmatpush3.bf16.msra.mxu1 %v448_v24  ;;  %p545_p10 = scmp.ne.s32.totalorder %s306_s7, %s544_s4  ;;  %p550_p12 = scmp.lt.s32.totalorder %s544_s4, %s544_s4 }
  0x45   :  { %450 = vmatprep.subr.bf16.mxu1 %v577_v0 }
  0x46   :  { %431 = vmatpush3.bf16.msra.mxu0 %v430_v21  ;;  %p551_p13 = por %p550_p12, %p549_p11 }
  0x47   :  { %432 = vmatprep.subr.bf16.mxu0 %v577_v0 }
  0x48   :  { %452 = vmatpush3.bf16.msra.mxu1 %v451_v30  ;;  %p552_p0 = pnand %p551_p13, %p545_p10 }
  0x49   :  { %453 = vmatprep.subr.bf16.mxu1 %v577_v0 }
  0x4a   :  { %434 = vmatpush3.bf16.msra.mxu0 %v433_v27 }
  0x4b   :  { %435 = vmatprep.subr.bf16.mxu0 %v577_v0 }
  0x4c   :  { %455 = vmatpush3.bf16.msra.mxu1 %v454_v36 }
  0x4d   :  { %456 = vmatprep.subr.bf16.mxu1 %v577_v0 }
  0x4e   :  { %437 = vmatpush3.bf16.msra.mxu0 %v436_v33 }
  0x4f   :  { %438 = vmatprep.subr.bf16.mxu0 %v577_v0 }
  0x50   :  { %458 = vmatpush3.bf16.msra.mxu1 %v457_v40 }
  0x51   :  { %459 = vmatprep.subr.bf16.mxu1 %v577_v0 }
  0x52   :  { %440 = vmatpush3.bf16.msra.mxu0 %v439_v39 }
  0x53   :  { %380 = vmatprep.subr.mxu0 %v579_v1 }
  0x54   :  { %461 = vmatpush3.bf16.msra.mxu1 %v460_v44 }
  0x55   :  { %462 = vmatprep.subr.bf16.mxu1 %v577_v0 }
  0x56   :  { %381 = vmatpush3.msk.msra.mxu0 %vm87_vm1, %v75_v43 }
  0x57   :  { %383 = vmatmul.mubr.msk.f32.vlgmr.msra.gmra.mrb[0].mxu0 %vm83_vm2, %v60_v45 }
  0x58   :  { %464 = vmatpush3.bf16.msra.mxu1 %v463_v48 }
 0x12a   :  { %v157_v50 = vpop.f32.mrb[0].mxu0 }
 0x12b   :  { %v158_v51 = vadd.f32 %v315_v49, %v157_v50  ;;  %v384_v52 = vpop.f32.mrb[1].mxu0 }
 0x12d   :  { %v161_v53 = vmax.f32 %v158_v51, 0.0 }
 0x12f   :  { %418 = vmatmul.mubr.f32.vlgmr.msra.gmra.mrb[0].mxu1 %v161_v53 }
 0x202   :  { %v251_v55 = vpop.f32.mrb[0].mxu1 }
 0x203   :  { %v252_v56 = vadd.f32 %v318_v54, %v251_v55  ;;  %v419_v57 = vpop.f32.mrb[1].mxu1 }
 0x205   :  { %255 = vmax.xlane.f32.xlu0 %v252_v56 }
 0x292   :  { %v256_v58 = vpop.xlane.xlu0 %255 }
 0x293   :  { %v257_v59 = vsub.f32 %v252_v56, %v256_v58 }
 0x295   :  { %v258_v60 = vmul.f32 1.442695, %v257_v59 }
 0x297   :  { %474 = vpow2.f32 %v258_v60 }
 0x2a1   :  { %v475_v61 = vpop.eup %474 }
 0x2a2   :  { %260 = vadd.xlane.f32.xlu0 %v475_v61 }
 0x32f   :  { %v261_v62 = vpop.xlane.xlu0 %260 }
 0x330   :  { %476 = vlog2.f32 %v261_v62 }
 0x33a   :  { %v477_v63 = vpop.eup %476 }
 0x33b   :  { %v263_v0 = vmul.f32 0.6931472, %v477_v63 }
 0x33d   :  { %v264_v1 = vsub.f32 %v257_v59, %v263_v0 }
 0x33f   :  { %265 = vxpose.xlu1.b32.start.end [1/1] (short) (narrow) %v264_v1, 8 }
 0x3bf   :  { %v281_v2 = vpop.trf.xlu1 }
 0x3c0   :  { %298 = vst.msk [vmem:[#allocation8] sm:$0xff] %vm297_vm3, %v281_v2 }
 0x3c1   :  { %555 = shalt.err (!%p552_p0)
}
 0x3c2   :  { %s556_s10 = scalar_lea.hbm %s694_s5, 128 }
 0x3c3   :  { %p557_p1 = scmp.ne.s32.totalorder %s694_s5, %s556_s10  ;;  %p560_p2 = scmp.lt.u32.totalorder %s556_s10, %s694_s5 }
 0x3c5   :  { %p562_p3 = pnand %p560_p2, %p557_p1 }
 0x3c7   :  { %565 = shalt.err (!%p562_p3)
}
 0x3c8   :  { %308 = dma.vmem_to_hbm [thread:$0]  %s306_s7, 128, %s694_s5, [#allocation4]  }
 0x3c9   :  { %570 = dma.done.wait [#allocation4], 128  }
 0x3ca   :  { %571 = vsyncadd [#allocation4], 4294967168 }
 0x3cb   :  { %312 = vsyncpa [#allocation3], 1 }
 0x3cc   :  { %313 = vsyncpa [#allocation6], 1 }
 0x3cd   :  { %314 = vsyncpa [#allocation4], 1 }

</bundles_post_ra>
